<compile_context>
chip_gen: v5e
topology: v5e:2x2
jax: 0.10.0
libtpu: 0.0.40
codegen_flags: <defaults>
</compile_context>

<pallas_src>
import jax
import jax.numpy as jnp
from jax.experimental import pallas as pl
from jax.experimental.pallas import tpu as pltpu


def _cdiv(a, b):
    return -(-a // b)


def _round_up(a, m):
    return _cdiv(a, m) * m


def _conv1x1_scale_kernel(x_ref, w_ref, b_ref, o_ref):
    """x_ref: (1, C_in, T) VMEM block, spatial axis lane-dense.
    w_ref: (C_out, C_in) SMEM (scale already folded in).
    b_ref: (C_out,)      SMEM (scale already folded in).
    o_ref: (1, C_out, T) VMEM block."""
    c_in = x_ref.shape[1]
    c_out = o_ref.shape[1]

    # Load each channel row once (lane-dense (1, T) slabs); reuse across outputs.
    rows = [x_ref[0, c:c + 1, :] for c in range(c_in)]

    # C_out x C_in = 12 broadcast FMAs on the VPU; stores are full-lane-width.
    for o in range(c_out):
        acc = rows[0] * w_ref[o, 0]
        for c in range(1, c_in):
            acc = acc + rows[c] * w_ref[o, c]
        acc = acc + b_ref[o]
        o_ref[0, o:o + 1, :] = acc.astype(o_ref.dtype)


def torch_tensor_attr_net_forward(x_nchw, weight, bias, *, max_tile=32768):
    """x_nchw: (N, C_in, H, W); weight: (C_out, C_in, 1, 1); bias: (C_out,)."""
    N, C_in, H, W = x_nchw.shape
    C_out = weight.shape[0]
    S = H * W

    # Fold the "* x.size(1)" (== C_out) scale into the tiny weights/bias.
    w_mat = (weight.reshape(C_out, C_in) * float(C_out)).astype(jnp.float32)
    b_vec = (bias * float(C_out)).astype(jnp.float32)

    # Free reshape: NCHW -> (N, C_in, S). Channels on sublanes, spatial on lanes.
    x_flat = x_nchw.reshape(N, C_in, S)

    # Balanced lane-dense spatial tiling: T is a multiple of 128, <= ~max_tile.
    num_tiles = max(1, _cdiv(S, max_tile))
    T = _round_up(_cdiv(S, num_tiles), 128)
    S_pad = T * num_tiles
    if S_pad != S:
        x_flat = jnp.pad(x_flat, ((0, 0), (0, 0), (0, S_pad - S)))

    out = pl.pallas_call(
        _conv1x1_scale_kernel,
        out_shape=jax.ShapeDtypeStruct((N, C_out, S_pad), x_nchw.dtype),
        grid_spec=pltpu.PrefetchScalarGridSpec(
            num_scalar_prefetch=0,
            grid=(N, num_tiles),
            in_specs=[
                pl.BlockSpec((1, C_in, T), lambda n, s: (n, 0, s)),
                pl.BlockSpec(memory_space=pltpu.MemorySpace.SMEM),  # weights
                pl.BlockSpec(memory_space=pltpu.MemorySpace.SMEM),  # bias
            ],
            out_specs=pl.BlockSpec((1, C_out, T), lambda n, s: (n, 0, s)),
        ),
        compiler_params=pltpu.CompilerParams(
            dimension_semantics=("parallel", "parallel")),
    )(x_flat, w_mat, b_vec)

    if S_pad != S:
        out = out[:, :, :S]
    # torch's x.view(1, -1): output is already NCHW-contiguous -> free reshape.
    return out.reshape(1, N * C_out * S)


if __name__ == "__main__":
    key = jax.random.PRNGKey(0)
    k_x, k_w, k_b = jax.random.split(key, 3)

    # Shapes consistent with the module: Conv2d(3, 4, kernel_size=1).
    N, C_in, H, W = 2, 3, 16, 16
    C_out = 4

    x = jax.random.normal(k_x, (N, C_in, H, W), dtype=jnp.float32)
    weight = jax.random.normal(k_w, (C_out, C_in, 1, 1), dtype=jnp.float32) * 0.1
    bias = jax.random.normal(k_b, (C_out,), dtype=jnp.float32) * 0.1

    out = jax.block_until_ready(torch_tensor_attr_net_forward(x, weight, bias))

    # Pure-JAX reference (same semantics as the PyTorch forward).
    ref = (
        jnp.einsum("nchw,oc->nohw", x, weight.reshape(C_out, C_in))
        + bias.reshape(1, C_out, 1, 1)
    ) * C_out
    ref = ref.reshape(1, -1)

    assert out.shape == (1, N * C_out * H * W), out.shape
    assert jnp.allclose(out, ref, atol=1e-5, rtol=1e-5), float(
        jnp.max(jnp.abs(out - ref)))
    print("KERNEL_OK")
</pallas_src>

<mosaic_0001>
module attributes {stable_mosaic.version = 11 : i64} {
  func.func @_conv1x1_scale_kernel(%arg0: i32, %arg1: i32, %arg2: memref<1x3x256xf32, #tpu.memory_space<vmem>>, %arg3: memref<4x3xf32, #tpu.memory_space<smem>>, %arg4: memref<4xf32, #tpu.memory_space<smem>>, %arg5: memref<1x4x256xf32, #tpu.memory_space<vmem>>) attributes {dimension_semantics = [#tpu.dimension_semantics<parallel>, #tpu.dimension_semantics<parallel>], iteration_bounds = array<i64: 2, 1>, scalar_prefetch = 0 : i64, scratch_operands = 0 : i64, tpu.core_type = #tpu.core_type<tc>, window_params = [{transform_indices = @transform_0, window_bounds = array<i64: 1, 3, 256>}, {transform_indices = @transform_1, window_bounds = array<i64: 4, 3>}, {transform_indices = @transform_2, window_bounds = array<i64: 4>}, {transform_indices = @transform_3, window_bounds = array<i64: 1, 4, 256>}]} {
    %c0 = arith.constant 0 : index
    %c0_0 = arith.constant 0 : index
    %c0_1 = arith.constant 0 : index
    %0 = vector.load %arg2[%c0, %c0_0, %c0_1] : memref<1x3x256xf32, #tpu.memory_space<vmem>>, vector<1x1x256xf32>
    %1 = vector.shape_cast %0 : vector<1x1x256xf32> to vector<1x256xf32>
    %c0_2 = arith.constant 0 : index
    %c1 = arith.constant 1 : index
    %c0_3 = arith.constant 0 : index
    %2 = vector.load %arg2[%c0_2, %c1, %c0_3] : memref<1x3x256xf32, #tpu.memory_space<vmem>>, vector<1x1x256xf32>
    %3 = vector.shape_cast %2 : vector<1x1x256xf32> to vector<1x256xf32>
    %c0_4 = arith.constant 0 : index
    %c2 = arith.constant 2 : index
    %c0_5 = arith.constant 0 : index
    %4 = vector.load %arg2[%c0_4, %c2, %c0_5] : memref<1x3x256xf32, #tpu.memory_space<vmem>>, vector<1x1x256xf32>
    %5 = vector.shape_cast %4 : vector<1x1x256xf32> to vector<1x256xf32>
    %c0_6 = arith.constant 0 : index
    %c0_7 = arith.constant 0 : index
    %6 = memref.load %arg3[%c0_6, %c0_7] : memref<4x3xf32, #tpu.memory_space<smem>>
    %7 = vector.broadcast %6 : f32 to vector<1x256xf32>
    %8 = arith.mulf %1, %7 : vector<1x256xf32>
    %c0_8 = arith.constant 0 : index
    %c1_9 = arith.constant 1 : index
    %9 = memref.load %arg3[%c0_8, %c1_9] : memref<4x3xf32, #tpu.memory_space<smem>>
    %10 = vector.broadcast %9 : f32 to vector<1x256xf32>
    %11 = arith.mulf %3, %10 : vector<1x256xf32>
    %12 = arith.addf %8, %11 : vector<1x256xf32>
    %c0_10 = arith.constant 0 : index
    %c2_11 = arith.constant 2 : index
    %13 = memref.load %arg3[%c0_10, %c2_11] : memref<4x3xf32, #tpu.memory_space<smem>>
    %14 = vector.broadcast %13 : f32 to vector<1x256xf32>
    %15 = arith.mulf %5, %14 : vector<1x256xf32>
    %16 = arith.addf %12, %15 : vector<1x256xf32>
    %c0_12 = arith.constant 0 : index
    %17 = memref.load %arg4[%c0_12] : memref<4xf32, #tpu.memory_space<smem>>
    %18 = vector.broadcast %17 : f32 to vector<1x256xf32>
    %19 = arith.addf %16, %18 : vector<1x256xf32>
    %c0_13 = arith.constant 0 : index
    %c0_14 = arith.constant 0 : index
    %c0_15 = arith.constant 0 : index
    %20 = vector.load %arg5[%c0_13, %c0_14, %c0_15] : memref<1x4x256xf32, #tpu.memory_space<vmem>>, vector<1x1x256xf32>
    %21 = vector.shape_cast %20 : vector<1x1x256xf32> to vector<1x256xf32>
    %22 = vector.shape_cast %19 : vector<1x256xf32> to vector<1x1x256xf32>
    tpu.vector_store %arg5[%c0_13, %c0_14, %c0_15], %22 {strides = array<i32>} : memref<1x4x256xf32, #tpu.memory_space<vmem>>, vector<1x1x256xf32>,
    %c1_16 = arith.constant 1 : index
    %c0_17 = arith.constant 0 : index
    %23 = memref.load %arg3[%c1_16, %c0_17] : memref<4x3xf32, #tpu.memory_space<smem>>
    %24 = vector.broadcast %23 : f32 to vector<1x256xf32>
    %25 = arith.mulf %1, %24 : vector<1x256xf32>
    %c1_18 = arith.constant 1 : index
    %c1_19 = arith.constant 1 : index
    %26 = memref.load %arg3[%c1_18, %c1_19] : memref<4x3xf32, #tpu.memory_space<smem>>
    %27 = vector.broadcast %26 : f32 to vector<1x256xf32>
    %28 = arith.mulf %3, %27 : vector<1x256xf32>
    %29 = arith.addf %25, %28 : vector<1x256xf32>
    %c1_20 = arith.constant 1 : index
    %c2_21 = arith.constant 2 : index
    %30 = memref.load %arg3[%c1_20, %c2_21] : memref<4x3xf32, #tpu.memory_space<smem>>
    %31 = vector.broadcast %30 : f32 to vector<1x256xf32>
    %32 = arith.mulf %5, %31 : vector<1x256xf32>
    %33 = arith.addf %29, %32 : vector<1x256xf32>
    %c1_22 = arith.constant 1 : index
    %34 = memref.load %arg4[%c1_22] : memref<4xf32, #tpu.memory_space<smem>>
    %35 = vector.broadcast %34 : f32 to vector<1x256xf32>
    %36 = arith.addf %33, %35 : vector<1x256xf32>
    %c0_23 = arith.constant 0 : index
    %c1_24 = arith.constant 1 : index
    %c0_25 = arith.constant 0 : index
    %37 = vector.load %arg5[%c0_23, %c1_24, %c0_25] : memref<1x4x256xf32, #tpu.memory_space<vmem>>, vector<1x1x256xf32>
    %38 = vector.shape_cast %37 : vector<1x1x256xf32> to vector<1x256xf32>
    %39 = vector.shape_cast %36 : vector<1x256xf32> to vector<1x1x256xf32>
    tpu.vector_store %arg5[%c0_23, %c1_24, %c0_25], %39 {strides = array<i32>} : memref<1x4x256xf32, #tpu.memory_space<vmem>>, vector<1x1x256xf32>,
    %c2_26 = arith.constant 2 : index
    %c0_27 = arith.constant 0 : index
    %40 = memref.load %arg3[%c2_26, %c0_27] : memref<4x3xf32, #tpu.memory_space<smem>>
    %41 = vector.broadcast %40 : f32 to vector<1x256xf32>
    %42 = arith.mulf %1, %41 : vector<1x256xf32>
    %c2_28 = arith.constant 2 : index
    %c1_29 = arith.constant 1 : index
    %43 = memref.load %arg3[%c2_28, %c1_29] : memref<4x3xf32, #tpu.memory_space<smem>>
    %44 = vector.broadcast %43 : f32 to vector<1x256xf32>
    %45 = arith.mulf %3, %44 : vector<1x256xf32>
    %46 = arith.addf %42, %45 : vector<1x256xf32>
    %c2_30 = arith.constant 2 : index
    %c2_31 = arith.constant 2 : index
    %47 = memref.load %arg3[%c2_30, %c2_31] : memref<4x3xf32, #tpu.memory_space<smem>>
    %48 = vector.broadcast %47 : f32 to vector<1x256xf32>
    %49 = arith.mulf %5, %48 : vector<1x256xf32>
    %50 = arith.addf %46, %49 : vector<1x256xf32>
    %c2_32 = arith.constant 2 : index
    %51 = memref.load %arg4[%c2_32] : memref<4xf32, #tpu.memory_space<smem>>
    %52 = vector.broadcast %51 : f32 to vector<1x256xf32>
    %53 = arith.addf %50, %52 : vector<1x256xf32>
    %c0_33 = arith.constant 0 : index
    %c2_34 = arith.constant 2 : index
    %c0_35 = arith.constant 0 : index
    %54 = vector.load %arg5[%c0_33, %c2_34, %c0_35] : memref<1x4x256xf32, #tpu.memory_space<vmem>>, vector<1x1x256xf32>
    %55 = vector.shape_cast %54 : vector<1x1x256xf32> to vector<1x256xf32>
    %56 = vector.shape_cast %53 : vector<1x256xf32> to vector<1x1x256xf32>
    tpu.vector_store %arg5[%c0_33, %c2_34, %c0_35], %56 {strides = array<i32>} : memref<1x4x256xf32, #tpu.memory_space<vmem>>, vector<1x1x256xf32>,
    %c3 = arith.constant 3 : index
    %c0_36 = arith.constant 0 : index
    %57 = memref.load %arg3[%c3, %c0_36] : memref<4x3xf32, #tpu.memory_space<smem>>
    %58 = vector.broadcast %57 : f32 to vector<1x256xf32>
    %59 = arith.mulf %1, %58 : vector<1x256xf32>
    %c3_37 = arith.constant 3 : index
    %c1_38 = arith.constant 1 : index
    %60 = memref.load %arg3[%c3_37, %c1_38] : memref<4x3xf32, #tpu.memory_space<smem>>
    %61 = vector.broadcast %60 : f32 to vector<1x256xf32>
    %62 = arith.mulf %3, %61 : vector<1x256xf32>
    %63 = arith.addf %59, %62 : vector<1x256xf32>
    %c3_39 = arith.constant 3 : index
    %c2_40 = arith.constant 2 : index
    %64 = memref.load %arg3[%c3_39, %c2_40] : memref<4x3xf32, #tpu.memory_space<smem>>
    %65 = vector.broadcast %64 : f32 to vector<1x256xf32>
    %66 = arith.mulf %5, %65 : vector<1x256xf32>
    %67 = arith.addf %63, %66 : vector<1x256xf32>
    %c3_41 = arith.constant 3 : index
    %68 = memref.load %arg4[%c3_41] : memref<4xf32, #tpu.memory_space<smem>>
    %69 = vector.broadcast %68 : f32 to vector<1x256xf32>
    %70 = arith.addf %67, %69 : vector<1x256xf32>
    %c0_42 = arith.constant 0 : index
    %c3_43 = arith.constant 3 : index
    %c0_44 = arith.constant 0 : index
    %71 = vector.load %arg5[%c0_42, %c3_43, %c0_44] : memref<1x4x256xf32, #tpu.memory_space<vmem>>, vector<1x1x256xf32>
    %72 = vector.shape_cast %71 : vector<1x1x256xf32> to vector<1x256xf32>
    %73 = vector.shape_cast %70 : vector<1x256xf32> to vector<1x1x256xf32>
    tpu.vector_store %arg5[%c0_42, %c3_43, %c0_44], %73 {strides = array<i32>} : memref<1x4x256xf32, #tpu.memory_space<vmem>>, vector<1x1x256xf32>,
    return
  }
  func.func @transform_0(%arg0: i32, %arg1: i32) -> (i32, i32, i32) {
    %c0_i32 = arith.constant 0 : i32
    %c0_i32_0 = arith.constant 0 : i32
    return %arg0, %c0_i32, %arg1 : i32, i32, i32
  }
  func.func @transform_1(%arg0: i32, %arg1: i32) -> (i32, i32) {
    %c0_i32 = arith.constant 0 : i32
    %c0_i32_0 = arith.constant 0 : i32
    %c0_i32_1 = arith.constant 0 : i32
    return %c0_i32, %c0_i32_0 : i32, i32
  }
  func.func @transform_2(%arg0: i32, %arg1: i32) -> i32 {
    %c0_i32 = arith.constant 0 : i32
    %c0_i32_0 = arith.constant 0 : i32
    return %c0_i32 : i32
  }
  func.func @transform_3(%arg0: i32, %arg1: i32) -> (i32, i32, i32) {
    %c0_i32 = arith.constant 0 : i32
    %c0_i32_0 = arith.constant 0 : i32
    return %arg0, %c0_i32, %arg1 : i32, i32, i32
  }
}

</mosaic_0001>

<bundles_post_ra>
// kernel: tpu_custom_call.1
= control target key start
LH: loop header
LB: loop body
LE: loop exit
PB: predicated region body
PF: predicated region fallthrough
CT: control target
= control target key end

     0   :  { %8 = vsyncpa [#allocation4], 0  ;;  %s816_s0 = inlined_call_operand.vmem [shape: f32[2,3,256], index: 0, kind: input, shape index: {}]   ;;  %s817_s1 = inlined_call_operand.vmem [shape: f32[4,3], index: 1, kind: input, shape index: {}]   ;;  %s818_s2 = inlined_call_operand.vmem [shape: f32[4], index: 2, kind: input, shape index: {}]   ;;  %s819_s3 = inlined_call_operand.hbm [shape: f32[2,4,256], index: 3, kind: output, shape index: {}]  }
   0x1   :  { %9 = vsyncpa [#allocation6], 0 }
   0x2   :  { %10 = vsyncpa [#allocation3], 0 }
   0x3   :  { %12 = vsyncpa [#allocation3 + $0x1], 0  ;;  %s670_s12 = smov 0   ;;  %s672_s13 = smov 0  }
   0x4   :  { %s674_s14 = smov 0   ;;  %s676_s15 = smov 0  }
   0x5   :  { %s678_s16 = smov 0   ;;  %s680_s17 = smov 0  }
   0x6 LB: > { %s416_s18 = sadd.s32 4294967295, %s646_s17   ;;  %s417_s19 = sadd.s32 4294967294, %s646_s17   ;;  %s646_s17 = sphi %s680_s17, %s18_s17   ;;  %s642_s16 = sphi %s678_s16, %s829_s16   ;;  %s638_s15 = sphi %s676_s15, %s828_s15   ;;  %s634_s14 = sphi %s674_s14, %s827_s14   ;;  %s630_s13 = sphi %s672_s13, %s826_s13   ;;  %s626_s12 = sphi %s670_s12, %s825_s12  }
   0x7   : > { %s30_s20 = sadd.s32 1, %s642_s16  ;;  %s109_s21 = sadd.s32 1, %s634_s14 }
   0x8   : > { %p32_p0 = scmp.ge.s32.totalorder %s30_s20, 2  ;;  %p119_p1 = scmp.ne.s32.totalorder %s634_s14, %s630_s13 }
   0x9   : > { %p120_p2 = scmp.eq.s32.totalorder %s416_s18, 1  ;;  %p125_p3 = scmp.ne.s32.totalorder %s630_s13, %s626_s12 }
   0xa   : > { %s831_s20 = smov (%p32_p0, %s30_s20), 0  ;;  %p126_p5 = scmp.eq.s32.totalorder %s417_s19, 1 }
   0xb   : > { %p710_p4 = por %p120_p2, %p119_p1  ;;  %s104_s23 = ssub.s32 %s642_s16, %s831_s20 }
   0xc   : > { %p418_p6 = scmp.ge.s32.totalorder %s646_s17, 1  ;;  %p107_p7 = scmp.eq.s32.totalorder %s104_s23, 0 }
   0xd   : > { %p717_p8 = por %p126_p5, %p125_p3  ;;  %p133_p9 = scmp.lt.s32.totalorder %s646_s17, 3 }
   0xe   : > { %s723_s25 = scalar_select %p107_p7, %s634_s14, %s109_s21  }
   0xf   : > { %p134_p10 = pnand %p418_p6, %p133_p9  ;;  %p725_p11 = scmp.eq.s32.totalorder %s416_s18, 0 }
  0x10   : > { %s145_s29 = sshll.u32 %s817_s1, 4  ;;  %s155_s5 = sshll.u32 %s818_s2, 4  ;;  %s146_s29 = int_to_ptr.vmem [resolvable:$true] %s145_s29  ;;  %s156_s5 = int_to_ptr.vmem [resolvable:$true] %s155_s5 }
  0x11   : > { %p464_p12 = pneg %p134_p10  ;;  %s648_s6 = smov [#allocation2]  }
  0x12   : > { %s649_s7 = smov [#allocation5]   ;;  %181 = sbr.rel (%p134_p10) target bundleno = 61 (0x3d), region = 32 }
  0x13   : > { %p465_p13 = pnand %p725_p11, %p464_p12 }
  0x15   : > { %467 = dma.vmem_to_smem (!%p465_p13), %s146_s29, 64, %s648_s6, [#allocation4]  }
  0x16   : > { %470 = dma.vmem_to_smem (!%p465_p13), %s156_s5, 16, %s649_s7, [#allocation6]  }
  0x17   : > { %613 = dma.done.wait (%p725_p11), [#allocation4], 64  }
  0x18   : > { %615 = vsyncadd (%p725_p11), [#allocation4], 4294967232 }
  0x19   : > { %617 = dma.done.wait (%p725_p11), [#allocation6], 16  }
  0x1a   : > { %619 = vsyncadd (%p725_p11), [#allocation6], 4294967280 }
  0x1b   : > { %193 = sfence }
  0x1c   : > { %p217_p0 = scmp.lt.s32.totalorder %s638_s15, 1  ;;  %s232_s8 = sld [smem:[#allocation2]]  ;;  %v246_v8 = vlaneseq }
  0x1d   : > { %s430_s9 = sld [smem:[#allocation2 + $0x1]]  ;;  %s213_s26 = sand.u32 1, %s630_s13  }
  0x1e   : > { %s218_s10 = scalar_select %p217_p0, %s638_s15, 1  ;;  %vm755_vm0 = vcmp.lt.s32.totalorder %v246_v8, 256 }
  0x1f   : > { %s431_s11 = sld [smem:[#allocation2 + $0x2]]  ;;  %s425_s5 = sshll.u32 %s213_s26, 3 }
  0x20   : > { %s452_s18 = sshll.u32 %s218_s10, 3  ;;  %s243_s19 = sld [smem:[#allocation5]] }
  0x21   : > { %s224_s27 = scalar_lea.vmem %s816_s0, %s452_s18  ;;  %s432_s28 = sld [smem:[#allocation2 + $0x80]] }
  0x22   : > { %v227_v0 = vld [vmem:[%s224_s27] ss:$4 sm:$0x3]  ;;  %v428_v1 = vld [vmem:[%s224_s27 + $0x1] ss:$4 sm:$0x3]  ;;  %v233_v2 = vstv %s232_s8 }
  0x23   : > { %v429_v3 = vld [vmem:[%s224_s27 + $0x2] ss:$4 sm:$0x3]  ;;  %v234_v4 = vmul.f32 %v233_v2, %v227_v0  ;;  %v236_v5 = vstv %s430_s9  ;;  %s433_s29 = sld [smem:[#allocation2 + $0x81]]  ;;  %s761_s18 = scalar_lea.vmem [#allocation7], %s425_s5 }
  0x24   : > { %v237_v6 = vmul.f32 %v428_v1, %v236_v5  ;;  %s434_s30 = sld [smem:[#allocation2 + $0x82]]  ;;  %s453_s23 = sshll.u32 %s638_s15, 3 }
  0x25   : > { %v240_v7 = vstv %s431_s11  ;;  %s751_s4 = sld [smem:[#allocation5 + $0x1]]  ;;  %s313_s15 = scalar_lea.hbm %s819_s3, %s453_s23 }
  0x26   : > { %v238_v9 = vadd.f32 %v237_v6, %v234_v4  ;;  %v241_v10 = vmul.f32 %v429_v3, %v240_v7  ;;  %s437_s6 = sld [smem:[#allocation2 + $0x100]]  ;;  %v244_v11 = vstv %s243_s19 }
  0x27   : > { %v252_v12 = vstv %s432_s28  ;;  %s438_s7 = sld [smem:[#allocation2 + $0x101]] }
  0x28   : > { %v242_v13 = vadd.f32 %v241_v10, %v238_v9  ;;  %v253_v14 = vmul.f32 %v252_v12, %v227_v0  ;;  %s439_s8 = sld [smem:[#allocation2 + $0x102]] }
  0x29   : > { %v255_v16 = vstv %s433_s29  ;;  %s759_s9 = sld [smem:[#allocation5 + $0x2]]  ;;  %s315_s29 = sshll.u32 %s761_s18, 4  ;;  %s316_s29 = int_to_ptr.vmem [resolvable:$true] %s315_s29 }
  0x2a   : > { %v245_v17 = vadd.f32 %v244_v11, %v242_v13  ;;  %v256_v18 = vmul.f32 %v428_v1, %v255_v16  ;;  %v259_v19 = vstv %s434_s30  ;;  %s442_s10 = sld [smem:[#allocation2 + $0x180]]  ;;  %s317_s30 = sshll.u32 %s313_s15, 4  ;;  %s318_s30 = int_to_ptr.hbm [resolvable:$true] %s317_s30 }
  0x2b   : > { %v260_v20 = vmul.f32 %v429_v3, %v259_v19  ;;  %s443_s11 = sld [smem:[#allocation2 + $0x181]]  ;;  %v263_v23 = vstv %s751_s4  ;;  %s300_s4 = scalar_lea.sflag [#allocation3], %s213_s26 }
  0x2c   : > { %250 = vst.msk [vmem:[%s761_s18] ss:$4 sm:$0x3] %vm755_vm0, %v245_v17  ;;  %v257_v21 = vadd.f32 %v256_v18, %v253_v14  ;;  %v268_v22 = vstv %s437_s6  ;;  %s444_s19 = sld [smem:[#allocation2 + $0x182]]  ;;  %s574_s5 = sshra.s32 %s318_s30, 4  ;;  %s575_s5 = int_to_ptr.hbm [resolvable:$true] %s574_s5 }
  0x2d   : > { %v269_v24 = vmul.f32 %v268_v22, %v227_v0  ;;  %v271_v25 = vstv %s438_s7  ;;  %s445_s21 = sld [smem:[#allocation5 + $0x3]]  ;;  %s576_s6 = scalar_lea.hbm %s575_s5, 8 }
  0x2e   : > { %v261_v26 = vadd.f32 %v260_v20, %v257_v21  ;;  %v272_v27 = vmul.f32 %v428_v1, %v271_v25  ;;  %v275_v28 = vstv %s439_s8  ;;  %p577_p1 = scmp.ne.s32.totalorder %s575_s5, %s576_s6  ;;  %p581_p5 = scmp.lt.s32.totalorder %s575_s5, %s819_s3 }
  0x2f   : > { %v276_v29 = vmul.f32 %v429_v3, %v275_v28  ;;  %v279_v33 = vstv %s759_s9  ;;  %s580_s9 = scalar_lea.hbm %s819_s3, 16 }
  0x30   : > { %v264_v30 = vadd.f32 %v263_v23, %v261_v26  ;;  %v273_v31 = vadd.f32 %v272_v27, %v269_v24  ;;  %v284_v32 = vstv %s442_s10  ;;  %p578_p2 = pnand %p577_p1, %p710_p4  ;;  %p582_p6 = scmp.lt.s32.totalorder %s580_s9, %s576_s6 }
  0x31   : > { %v285_v34 = vmul.f32 %v284_v32, %v227_v0  ;;  %v287_v35 = vstv %s443_s11 }
  0x32   : > { %436 = vst.msk [vmem:[%s761_s18 + $0x1] ss:$4 sm:$0x3] %vm755_vm0, %v264_v30  ;;  %v277_v36 = vadd.f32 %v276_v29, %v273_v31  ;;  %v288_v37 = vmul.f32 %v428_v1, %v287_v35  ;;  %v291_v38 = vstv %s444_s19  ;;  %p579_p3 = pneg %p578_p2  ;;  %p583_p7 = por %p582_p6, %p581_p5 }
  0x33   : > { %v292_v39 = vmul.f32 %v429_v3, %v291_v38  ;;  %v295_v42 = vstv %s445_s21 }
  0x34   : > { %v280_v40 = vadd.f32 %v279_v33, %v277_v36  ;;  %v289_v41 = vadd.f32 %v288_v37, %v285_v34  ;;  %p584_p9 = pnand %p583_p7, %p579_p3 }
  0x36   : > { %441 = vst.msk [vmem:[%s761_s18 + $0x2] ss:$4 sm:$0x3] %vm755_vm0, %v280_v40  ;;  %v293_v43 = vadd.f32 %v292_v39, %v289_v41 }
  0x38   : > { %v296_v44 = vadd.f32 %v295_v42, %v293_v43 }
  0x3a   : > { %446 = vst.msk [vmem:[%s761_s18 + $0x3] ss:$4 sm:$0x3] %vm755_vm0, %v296_v44 }
  0x3b   : > { %587 = shalt.err (!%p584_p9)
}
  0x3c   : > { %462 = dma.vmem_to_hbm [thread:$0]  (%p710_p4), %s316_s29, 128, %s318_s30, %s300_s4  }
  0x3d PF: > { %p479_p10 = scmp.ge.s32.totalorder %s646_s17, 2  ;;  %s329_s26 = sand.u32 1, %s626_s12  }
  0x3e   : > { %s330_s18 = scalar_lea.sflag [#allocation3], %s329_s26 }
  0x3f   : > { %p472_p11 = pnand %p479_p10, %p717_p8 }
  0x41   : > { %p473_p12 = pneg %p472_p11 }
  0x43   : > { %621 = dma.done.wait (%p473_p12), %s330_s18, 128  }
  0x44   : > { %623 = vsyncadd (%p473_p12), %s330_s18, 4294967168  ;;  %s18_s17 = sadd.s32 1, %s646_s17   ;;  %s825_s12 = smov %s630_s13 }
  0x45   : > { %p15_p13 = scmp.ge.s32.totalorder %s18_s17, 4   ;;  %s826_s13 = smov %s634_s14 }
  0x46   : > { %s827_s14 = smov %s723_s25  ;;  %s828_s15 = smov %s642_s16 }
  0x47   : > { %s829_s16 = smov %s831_s20  ;;  %17 = sbr.rel (!%p15_p13) target bundleno = 6 (0x6), region = 81 }
  0x4c   :  { %336 = vsyncpa [#allocation3], 1 }
  0x4d   :  { %338 = vsyncpa [#allocation3 + $0x1], 1 }
  0x4e   :  { %339 = vsyncpa [#allocation4], 1 }
  0x4f   :  { %341 = vsyncpa [#allocation4 + $0x1], 1 }
  0x50   :  { %342 = vsyncpa [#allocation6], 1 }

</bundles_post_ra>
